<compile_context>
chip_gen: v6e
topology: v6e:2x2x1
jax: 0.10.0
libtpu: 0.0.40
codegen_flags: <defaults>
</compile_context>

<pallas_src>
import jax
import jax.numpy as jnp
from jax import lax
from jax.experimental import pallas as pl
from jax.experimental.pallas import tpu as pltpu


_G = 16  # scalars per face in the SMEM face table (see _face_table)


# ---------------- Kernel 1: world -> view -> NDC vertex transform (lane-dense) ----------------
def _vertex_ndc_kernel(cam_ref, pos_ref, out_ref):
    # cam_ref : flat SMEM f32 table, 18 scalars per batch: R(9, row-major), T(3), f(3), p(3)
    # pos_ref : (3, V) world positions, V in lanes
    # out_ref : (3, V) -> rows are (x_ndc, y_ndc, z_view)
    b = pl.program_id(0)
    base = b * 18
    r = [cam_ref[base + k] for k in range(9)]
    t0 = cam_ref[base + 9]
    t1 = cam_ref[base + 10]
    t2 = cam_ref[base + 11]
    fx = cam_ref[base + 12]
    fy = cam_ref[base + 13]
    px0 = cam_ref[base + 15]
    py0 = cam_ref[base + 16]

    wx = pos_ref[0:1, :]                      # (1, V)
    wy = pos_ref[1:2, :]
    wz = pos_ref[2:3, :]
    # view = v @ R + T  (row-vector convention): view_j = sum_i v_i * R[i, j]
    vx = wx * r[0] + wy * r[3] + wz * r[6] + t0
    vy = wx * r[1] + wy * r[4] + wz * r[7] + t1
    vz = wx * r[2] + wy * r[5] + wz * r[8] + t2

    inv_z = 1.0 / vz                          # one reciprocal instead of 3 broadcast divides
    # TODO(synk): the three (1, V) row writes are masked sublane stores; this kernel is a
    #             negligible fraction of runtime (tiny batched 3x4 matvec), so left as-is.
    out_ref[0:1, :] = vx * fx * inv_z + px0   # x_ndc
    out_ref[1:2, :] = vy * fy * inv_z + py0   # y_ndc
    out_ref[2:3, :] = vz                      # module overrides projected z with view depth


# ---------------- Kernel 2: hard rasterizer (K = 1), tiled over the image ----------------
def _make_raster_kernel(n_faces, height, width, tile_h, tile_w, x_half, y_half):
    F, H, W, TH, TW = n_faces, height, width, tile_h, tile_w
    G = _G

    def kernel(facegeo_ref, p2f_ref, zbuf_ref):
        b = pl.program_id(0)
        ti = pl.program_id(1)
        tj = pl.program_id(2)

        col = (lax.broadcasted_iota(jnp.int32, (TH, TW), 1) + tj * TW).astype(jnp.float32)
        row = (lax.broadcasted_iota(jnp.int32, (TH, TW), 0) + ti * TH).astype(jnp.float32)
        # pytorch3d pixel-center NDC coords (+X left, +Y up)
        xf = x_half * (1.0 - (2.0 * col + 1.0) / W)
        yf = y_half * (1.0 - (2.0 * row + 1.0) / H)

        # NDC extent covered by this tile's pixel centers (scalars) for face-vs-tile culling.
        c_lo = (tj * TW).astype(jnp.float32)
        r_lo = (ti * TH).astype(jnp.float32)
        tile_x_hi = x_half * (1.0 - (2.0 * c_lo + 1.0) / W)                # leftmost col
        tile_x_lo = x_half * (1.0 - (2.0 * (c_lo + (TW - 1)) + 1.0) / W)   # rightmost col
        tile_y_hi = y_half * (1.0 - (2.0 * r_lo + 1.0) / H)                # top row
        tile_y_lo = y_half * (1.0 - (2.0 * (r_lo + (TH - 1)) + 1.0) / H)   # bottom row

        # Winner accumulators live directly in the output refs (no separate loop carry).
        zbuf_ref[...] = jnp.full((TH, TW), jnp.inf, jnp.float32)
        p2f_ref[...] = jnp.full((TH, TW), -1, jnp.int32)

        def do_face(f):
            base = (b * F + f) * G
            xmin = facegeo_ref[base + 0]
            xmax = facegeo_ref[base + 1]
            ymin = facegeo_ref[base + 2]
            ymax = facegeo_ref[base + 3]
            # Scalar bbox-vs-tile overlap test (scalar slots, essentially free).  Back-facing
            # / degenerate faces were given an empty bbox (xmin = +inf) by the prepass, so
            # they are skipped here too; for real meshes this culls the whole per-tile VPU
            # body for the vast majority of (face, tile) pairs.
            hit = ((xmin <= tile_x_hi) & (xmax >= tile_x_lo)
                   & (ymin <= tile_y_hi) & (ymax >= tile_y_lo))

            @pl.when(hit)
            def _():
                ea0 = facegeo_ref[base + 4]
                eb0 = facegeo_ref[base + 5]
                ec0 = facegeo_ref[base + 6]
                ea1 = facegeo_ref[base + 7]
                eb1 = facegeo_ref[base + 8]
                ec1 = facegeo_ref[base + 9]
                area = facegeo_ref[base + 10]
                z0 = facegeo_ref[base + 11]
                z1 = facegeo_ref[base + 12]
                z2 = facegeo_ref[base + 13]
                zz0 = facegeo_ref[base + 14]           # z1 * z2 (precomputed)
                zz1 = facegeo_ref[base + 15]           # z0 * z2 (precomputed)
                zz2 = z0 * z1                          # scalar slot

                # Affine edge functions (coefficients precomputed per face in the prepass);
                # the third edge follows from e0 + e1 + e2 == area (1/area cancels in the
                # perspective-correct normalisation, so it is never formed).
                e0 = ea0 * xf + eb0 * yf + ec0
                e1 = ea1 * xf + eb1 * yf + ec1
                e2 = (area - e0) - e1
                # area > 0 inside this branch, so raw edge signs decide coverage.
                inside = (e0 > 0.0) & (e1 > 0.0) & (e2 > 0.0)

                # Perspective-correct, clipped depth: the common 1/denom factor cancels in
                # pz = sum(clip(t_i)*z_i) / sum(clip(t_i)), so one approx reciprocal (EUP
                # slot) suffices.  Clipped barycentrics for the winner are recomputed exactly
                # in the JAX epilogue, so no per-face bary state is tracked here.
                t0 = e0 * zz0
                t1 = e1 * zz1
                t2 = e2 * zz2
                u0 = jnp.maximum(t0, 0.0)
                u1 = jnp.maximum(t1, 0.0)
                u2 = jnp.maximum(t2, 0.0)
                den = jnp.maximum(u0 + u1 + u2, 1e-10)
                pz = (u0 * z0 + u1 * z1 + u2 * z2) * pl.reciprocal(den, approx=True)

                # blur_radius == 0 -> only strictly-inside pixels; faces_per_pixel == 1.
                best_z = zbuf_ref[...]
                valid = inside & (pz >= 0.0) & (pz < best_z)
                zbuf_ref[...] = jnp.where(valid, pz, best_z)
                p2f_ref[...] = jnp.where(valid, f, p2f_ref[...])

        # Static 2x unroll of the face loop: two independent faces' scalar loads / EUP
        # reciprocals per iteration for the LLO scheduler to interleave.
        if F >= 2:
            @pl.loop(0, F // 2)
            def _pair(i):
                do_face(2 * i)
                do_face(2 * i + 1)
        if F % 2 == 1:
            do_face(F - 1)

        # Finalize: map "no face" to the pytorch3d fill values and pack face ids.
        bf = p2f_ref[...]
        found = bf >= 0
        p2f_ref[...] = jnp.where(found, bf + b * F, -1)
        zbuf_ref[...] = jnp.where(found, zbuf_ref[...], -1.0)

    return kernel


# ---------------- JAX glue (camera setup, prepass, epilogue, Fragments packing) ----------------
def _camera_params(intrinsics, extrinsics, img_shape):
    H, W = img_shape
    R = extrinsics[:, :3, :3]
    tvec = extrinsics[:, :3, 3]
    fx = intrinsics[:, 0, 0]
    fy = intrinsics[:, 1, 1]
    cx = intrinsics[:, 0, 2]
    cy = intrinsics[:, 1, 2]
    scale = min(W, H) / 2.0
    flip = jnp.array([-1.0, -1.0, 1.0], jnp.float32)
    R_p3d = jnp.transpose(R, (0, 2, 1)) * flip[None, None, :]   # negate first two columns
    T_p3d = tvec * flip[None, :]                                 # negate first two entries
    f_vec = jnp.stack([fx / scale, fy / scale, jnp.ones_like(fx)], axis=-1)
    p_vec = jnp.stack([-(cx - W / 2.0) / scale, -(cy - H / 2.0) / scale,
                       jnp.zeros_like(cx)], axis=-1)
    return R_p3d, T_p3d, f_vec, p_vec


def _face_table(verts_ndc, faces):
    """Per-face prepass -> flat (B*F*_G,) f32 SMEM table.

    Entries per face: screen bbox (empty, xmin=+inf, for back-facing / zero-area faces so
    the in-kernel bbox test also performs the cull), affine edge coefficients for two edges,
    signed area (third edge = area - e0 - e1), vertex depths, and two depth products.
    """
    fv = verts_ndc[:, faces, :]                            # (B, F, 3 verts, 3 xyz)
    x0, y0, z0 = fv[..., 0, 0], fv[..., 0, 1], fv[..., 0, 2]
    x1, y1, z1 = fv[..., 1, 0], fv[..., 1, 1], fv[..., 1, 2]
    x2, y2, z2 = fv[..., 2, 0], fv[..., 2, 1], fv[..., 2, 2]

    area = (x2 - x0) * (y1 - y0) - (y2 - y0) * (x1 - x0)
    keep = area > 0.0                                      # cull_backfaces=True + zero-area skip
    xmin = jnp.where(keep, jnp.minimum(jnp.minimum(x0, x1), x2), jnp.inf)
    xmax = jnp.maximum(jnp.maximum(x0, x1), x2)
    ymin = jnp.minimum(jnp.minimum(y0, y1), y2)
    ymax = jnp.maximum(jnp.maximum(y0, y1), y2)

    # e0(p) = (p-v1) x (v2-v1),  e1(p) = (p-v2) x (v0-v2), in affine form A*x + B*y + C.
    ea0, eb0, ec0 = y2 - y1, x1 - x2, y1 * x2 - x1 * y2
    ea1, eb1, ec1 = y0 - y2, x2 - x0, y2 * x0 - x2 * y0

    table = jnp.stack([xmin, xmax, ymin, ymax,
                       ea0, eb0, ec0, ea1, eb1, ec1,
                       area, z0, z1, z2, z1 * z2, z0 * z2], axis=-1)    # (B, F, _G)
    return fv, table.reshape(-1)


def _pick_tile(dim, align, pref):
    """Largest multiple of `align` that divides `dim` and is <= pref; full dim otherwise."""
    if dim % align != 0 or dim <= pref:
        return dim
    best = dim
    t = align
    while t <= pref:
        if dim % t == 0:
            best = t
        t += align
    return best if best <= pref else dim


def vertex_shader_forward(vertices, faces, intrinsics, extrinsics, img_shape, blur_sigma):
    # TODO(synk): only the hard-rasterization path (blur_sigma == 0 -> blur_radius = 0,
    #             faces_per_pixel = 1) is implemented; soft blur / K=4 top-K is not.
    assert blur_sigma == 0.0
    # TODO(synk): cameras=None (no projection, perspective_correct=False) path not wired.
    assert intrinsics is not None

    positions = vertices["positions"].astype(jnp.float32)
    B, V, _ = positions.shape
    H, W = img_shape
    Fc = int(faces.shape[0])

    # ---- cameras + NDC vertex transform (Pallas kernel 1, lane-dense (3, V)) ----
    R_p3d, T_p3d, f_vec, p_vec = _camera_params(
        intrinsics.astype(jnp.float32), extrinsics.astype(jnp.float32), img_shape)
    cam = jnp.concatenate(
        [R_p3d.reshape(B, 9), T_p3d, f_vec, p_vec], axis=-1).reshape(-1)   # (B*18,)
    pos_t = jnp.transpose(positions, (0, 2, 1))                            # (B, 3, V)

    verts_ndc_t = pl.pallas_call(
        _vertex_ndc_kernel,
        out_shape=jax.ShapeDtypeStruct((B, 3, V), jnp.float32),
        grid=(B,),
        in_specs=[
            pl.BlockSpec(memory_space=pltpu.MemorySpace.SMEM),
            pl.BlockSpec((None, 3, V), lambda b: (b, 0, 0)),
        ],
        out_specs=pl.BlockSpec((None, 3, V), lambda b: (b, 0, 0)),
        compiler_params=pltpu.CompilerParams(dimension_semantics=("parallel",)),
    )(cam, pos_t)
    verts_ndc = jnp.transpose(verts_ndc_t, (0, 2, 1))                      # (B, V, 3)

    # ---- per-face prepass (bbox / edge coefficients / depths) -> flat 1-D SMEM table ----
    face_verts, facegeo = _face_table(verts_ndc, faces)
    # TODO(synk): for very large meshes (F in the thousands with B > 1) this whole-resident
    #             SMEM table hits the SMEM ceiling; switch to a per-batch blocked SMEM spec
    #             plus an innermost "arbitrary" face-chunk grid axis (pl.when init/finalize
    #             of the winner state), or bin faces per tile via PrefetchScalarGridSpec.

    range_x = 2.0 * W / H if W > H else 2.0
    range_y = 2.0 * H / W if H > W else 2.0
    x_half, y_half = range_x / 2.0, range_y / 2.0

    # ---- rasterizer (Pallas kernel 2), tiled over the image, all grid axes parallel ----
    # Moderate tiles: big enough to amortize the per-face scalar bbox test, small enough to
    # keep bbox culling effective.  2 output planes x TH x TW x 4 B x 2 buffers stays far
    # below every generation's scoped-VMEM default (incl. v5e's 16 MiB), and the grid keeps
    # multiple steps so v7x's two TensorCores both get work.
    TH = _pick_tile(H, 8, 64)
    TW = _pick_tile(W, 128, 512)
    kernel = _make_raster_kernel(Fc, H, W, TH, TW, x_half, y_half)

    plane_i = jax.ShapeDtypeStruct((B, H, W), jnp.int32)
    plane_f = jax.ShapeDtypeStruct((B, H, W), jnp.float32)
    out_block = pl.BlockSpec((None, TH, TW), lambda b, i, j: (b, i, j))

    p2f, zbuf = pl.pallas_call(
        kernel,
        out_shape=(plane_i, plane_f),
        grid=(B, H // TH, W // TW),
        in_specs=[pl.BlockSpec(memory_space=pltpu.MemorySpace.SMEM)],
        out_specs=(out_block, out_block),
        compiler_params=pltpu.CompilerParams(
            dimension_semantics=("parallel", "parallel", "parallel")),
    )(facegeo)

    # ---- JAX epilogue: winning-face-only barycentrics, point-edge distance, attributes ----
    # TODO(synk): at 1080p+ the fv_packed[safe]/face_attrs[safe] gathers can rival the raster
    #             kernel; if profiling shows that, move this into a small per-tile kernel.
    found = p2f >= 0                                      # (B, H, W)
    safe = jnp.where(found, p2f, 0)                       # packed index into (B*F, ...)

    fv_packed = face_verts.reshape(B * Fc, 3, 3)
    win = fv_packed[safe]                                 # (B, H, W, 3 verts, 3 xyz)
    cols = (2.0 * jnp.arange(W, dtype=jnp.float32) + 1.0) / W
    rows = (2.0 * jnp.arange(H, dtype=jnp.float32) + 1.0) / H
    pxf = (x_half * (1.0 - cols))[None, None, :]
    pyf = (y_half * (1.0 - rows))[None, :, None]

    wx0, wy0, wz0 = win[..., 0, 0], win[..., 0, 1], win[..., 0, 2]
    wx1, wy1, wz1 = win[..., 1, 0], win[..., 1, 1], win[..., 1, 2]
    wx2, wy2, wz2 = win[..., 2, 0], win[..., 2, 1], win[..., 2, 2]

    # Perspective-correct, clipped, renormalized barycentrics of the winner (exact math,
    # only the single winning face per pixel is touched).
    e0 = (pxf - wx1) * (wy2 - wy1) - (pyf - wy1) * (wx2 - wx1)
    e1 = (pxf - wx2) * (wy0 - wy2) - (pyf - wy2) * (wx0 - wx2)
    e2 = (pxf - wx0) * (wy1 - wy0) - (pyf - wy0) * (wx1 - wx0)
    t0 = e0 * (wz1 * wz2)
    t1 = e1 * (wz0 * wz2)
    t2 = e2 * (wz0 * wz1)
    den = jnp.maximum(t0 + t1 + t2, 1e-8)
    c0 = jnp.maximum(t0 / den, 0.0)
    c1 = jnp.maximum(t1 / den, 0.0)
    c2 = jnp.maximum(t2 / den, 0.0)
    csum = jnp.maximum(c0 + c1 + c2, 1e-5)
    bary = jnp.stack([c0 / csum, c1 / csum, c2 / csum], axis=-1)
    bary = jnp.where(found[..., None], bary, -1.0)        # (B, H, W, 3)

    def _seg_d2(ax, ay, bx, by):
        vx, vy = bx - ax, by - ay
        ux, uy = pxf - ax, pyf - ay
        l2 = jnp.maximum(vx * vx + vy * vy, 1e-8)
        t = jnp.clip((ux * vx + uy * vy) / l2, 0.0, 1.0)
        dx, dy = ux - t * vx, uy - t * vy
        return dx * dx + dy * dy

    d2 = jnp.minimum(jnp.minimum(_seg_d2(wx0, wy0, wx1, wy1), _seg_d2(wx1, wy1, wx2, wy2)),
                     _seg_d2(wx2, wy2, wx0, wy0))
    dists = jnp.where(found, -d2, -1.0)                   # winners are strictly inside

    attr_keys = [k for k in vertices if k != "positions"]
    pixels = {}
    if attr_keys:
        attrs_cat = jnp.concatenate(
            [vertices[k].astype(jnp.float32) for k in attr_keys], axis=-1)   # (B, V, C)
        C = int(attrs_cat.shape[-1])
        face_attrs = attrs_cat[:, faces, :].reshape(B * Fc, 3, C)            # packed (B*F, 3, C)
        win_attrs = face_attrs[safe]                                         # (B, H, W, 3, C)
        wbary = jnp.where(found[..., None], bary, 0.0)
        pix = jnp.einsum("bhwk,bhwkc->bhwc", wbary, win_attrs)               # (B, H, W, C)
        off = 0
        for k in attr_keys:
            ck = int(vertices[k].shape[-1])
            pixels[k] = pix[:, :, :, None, off:off + ck]
            off += ck

    fragments = {
        "pix_to_face": p2f[:, :, :, None],
        "zbuf": zbuf[:, :, :, None],
        "bary_coords": bary[:, :, :, None, :],
        "dists": dists[:, :, :, None],
    }
    return pixels, fragments


if __name__ == "__main__":
    key = jax.random.PRNGKey(0)
    B, V, Fc, H, W = 2, 8, 12, 16, 16

    cube = jnp.array([[-1, -1, -1], [1, -1, -1], [1, 1, -1], [-1, 1, -1],
                      [-1, -1, 1], [1, -1, 1], [1, 1, 1], [-1, 1, 1]], jnp.float32)
    faces = jnp.array([[0, 1, 2], [0, 2, 3], [4, 6, 5], [4, 7, 6],
                       [0, 4, 5], [0, 5, 1], [1, 5, 6], [1, 6, 2],
                       [2, 6, 7], [2, 7, 3], [3, 7, 4], [3, 4, 0]], jnp.int32)

    k0, k1, k2 = jax.random.split(key, 3)
    jitter = 0.05 * jax.random.normal(k0, (B, V, 3), jnp.float32)
    positions = cube[None] * 0.6 + jnp.array([0.0, 0.0, 3.0])[None, None] + jitter
    colors = jax.random.uniform(k1, (B, V, 3), dtype=jnp.float32)
    normals = jax.random.normal(k2, (B, V, 3), jnp.float32)
    normals = normals / jnp.linalg.norm(normals, axis=-1, keepdims=True)
    vertices = {"positions": positions, "colors": colors, "normals": normals}

    K = jnp.tile(jnp.array([[20.0, 0.0, W / 2.0],
                            [0.0, 20.0, H / 2.0],
                            [0.0, 0.0, 1.0]], jnp.float32)[None], (B, 1, 1))
    RT = jnp.tile(jnp.concatenate([jnp.eye(3, dtype=jnp.float32),
                                   jnp.zeros((3, 1), jnp.float32)], axis=1)[None], (B, 1, 1))

    pixels, fragments = vertex_shader_forward(vertices, faces, K, RT, (H, W), 0.0)
    jax.block_until_ready((pixels, fragments))

    assert pixels["colors"].shape == (B, H, W, 1, 3)
    assert pixels["normals"].shape == (B, H, W, 1, 3)
    assert fragments["pix_to_face"].shape == (B, H, W, 1)
    assert fragments["zbuf"].shape == (B, H, W, 1)
    assert fragments["bary_coords"].shape == (B, H, W, 1, 3)
    assert fragments["dists"].shape == (B, H, W, 1)
    print("KERNEL_OK")
</pallas_src>

<mosaic_0001>
module attributes {stable_mosaic.version = 11 : i64} {
  func.func @_vertex_ndc_kernel(%arg0: i32, %arg1: memref<36xf32, #tpu.memory_space<smem>>, %arg2: memref<1x3x8xf32, #tpu.memory_space<vmem>>, %arg3: memref<1x3x8xf32, #tpu.memory_space<vmem>>) attributes {dimension_semantics = [#tpu.dimension_semantics<parallel>], iteration_bounds = array<i64: 2>, scalar_prefetch = 0 : i64, scratch_operands = 0 : i64, tpu.core_type = #tpu.core_type<tc>, window_params = [{transform_indices = @transform_0, window_bounds = array<i64: 36>}, {transform_indices = @transform_1, window_bounds = array<i64: 1, 3, 8>}, {transform_indices = @transform_2, window_bounds = array<i64: 1, 3, 8>}]} {
    %c18_i32 = arith.constant 18 : i32
    %0 = arith.muli %arg0, %c18_i32 : i32
    %c0_i32 = arith.constant 0 : i32
    %1 = arith.addi %0, %c0_i32 : i32
    %2 = arith.index_cast %1 : i32 to index
    %3 = memref.load %arg1[%2] : memref<36xf32, #tpu.memory_space<smem>>
    %c1_i32 = arith.constant 1 : i32
    %4 = arith.addi %0, %c1_i32 : i32
    %5 = arith.index_cast %4 : i32 to index
    %6 = memref.load %arg1[%5] : memref<36xf32, #tpu.memory_space<smem>>
    %c2_i32 = arith.constant 2 : i32
    %7 = arith.addi %0, %c2_i32 : i32
    %8 = arith.index_cast %7 : i32 to index
    %9 = memref.load %arg1[%8] : memref<36xf32, #tpu.memory_space<smem>>
    %c3_i32 = arith.constant 3 : i32
    %10 = arith.addi %0, %c3_i32 : i32
    %11 = arith.index_cast %10 : i32 to index
    %12 = memref.load %arg1[%11] : memref<36xf32, #tpu.memory_space<smem>>
    %c4_i32 = arith.constant 4 : i32
    %13 = arith.addi %0, %c4_i32 : i32
    %14 = arith.index_cast %13 : i32 to index
    %15 = memref.load %arg1[%14] : memref<36xf32, #tpu.memory_space<smem>>
    %c5_i32 = arith.constant 5 : i32
    %16 = arith.addi %0, %c5_i32 : i32
    %17 = arith.index_cast %16 : i32 to index
    %18 = memref.load %arg1[%17] : memref<36xf32, #tpu.memory_space<smem>>
    %c6_i32 = arith.constant 6 : i32
    %19 = arith.addi %0, %c6_i32 : i32
    %20 = arith.index_cast %19 : i32 to index
    %21 = memref.load %arg1[%20] : memref<36xf32, #tpu.memory_space<smem>>
    %c7_i32 = arith.constant 7 : i32
    %22 = arith.addi %0, %c7_i32 : i32
    %23 = arith.index_cast %22 : i32 to index
    %24 = memref.load %arg1[%23] : memref<36xf32, #tpu.memory_space<smem>>
    %c8_i32 = arith.constant 8 : i32
    %25 = arith.addi %0, %c8_i32 : i32
    %26 = arith.index_cast %25 : i32 to index
    %27 = memref.load %arg1[%26] : memref<36xf32, #tpu.memory_space<smem>>
    %c9_i32 = arith.constant 9 : i32
    %28 = arith.addi %0, %c9_i32 : i32
    %29 = arith.index_cast %28 : i32 to index
    %30 = memref.load %arg1[%29] : memref<36xf32, #tpu.memory_space<smem>>
    %c10_i32 = arith.constant 10 : i32
    %31 = arith.addi %0, %c10_i32 : i32
    %32 = arith.index_cast %31 : i32 to index
    %33 = memref.load %arg1[%32] : memref<36xf32, #tpu.memory_space<smem>>
    %c11_i32 = arith.constant 11 : i32
    %34 = arith.addi %0, %c11_i32 : i32
    %35 = arith.index_cast %34 : i32 to index
    %36 = memref.load %arg1[%35] : memref<36xf32, #tpu.memory_space<smem>>
    %c12_i32 = arith.constant 12 : i32
    %37 = arith.addi %0, %c12_i32 : i32
    %38 = arith.index_cast %37 : i32 to index
    %39 = memref.load %arg1[%38] : memref<36xf32, #tpu.memory_space<smem>>
    %c13_i32 = arith.constant 13 : i32
    %40 = arith.addi %0, %c13_i32 : i32
    %41 = arith.index_cast %40 : i32 to index
    %42 = memref.load %arg1[%41] : memref<36xf32, #tpu.memory_space<smem>>
    %c15_i32 = arith.constant 15 : i32
    %43 = arith.addi %0, %c15_i32 : i32
    %44 = arith.index_cast %43 : i32 to index
    %45 = memref.load %arg1[%44] : memref<36xf32, #tpu.memory_space<smem>>
    %c16_i32 = arith.constant 16 : i32
    %46 = arith.addi %0, %c16_i32 : i32
    %47 = arith.index_cast %46 : i32 to index
    %48 = memref.load %arg1[%47] : memref<36xf32, #tpu.memory_space<smem>>
    %c0 = arith.constant 0 : index
    %c0_0 = arith.constant 0 : index
    %c0_1 = arith.constant 0 : index
    %49 = vector.load %arg2[%c0, %c0_0, %c0_1] : memref<1x3x8xf32, #tpu.memory_space<vmem>>, vector<1x1x8xf32>
    %50 = vector.shape_cast %49 : vector<1x1x8xf32> to vector<1x8xf32>
    %c0_2 = arith.constant 0 : index
    %c1 = arith.constant 1 : index
    %c0_3 = arith.constant 0 : index
    %51 = vector.load %arg2[%c0_2, %c1, %c0_3] : memref<1x3x8xf32, #tpu.memory_space<vmem>>, vector<1x1x8xf32>
    %52 = vector.shape_cast %51 : vector<1x1x8xf32> to vector<1x8xf32>
    %c0_4 = arith.constant 0 : index
    %c2 = arith.constant 2 : index
    %c0_5 = arith.constant 0 : index
    %53 = vector.load %arg2[%c0_4, %c2, %c0_5] : memref<1x3x8xf32, #tpu.memory_space<vmem>>, vector<1x1x8xf32>
    %54 = vector.shape_cast %53 : vector<1x1x8xf32> to vector<1x8xf32>
    %55 = vector.broadcast %3 : f32 to vector<1x8xf32>
    %56 = arith.mulf %50, %55 : vector<1x8xf32>
    %57 = vector.broadcast %12 : f32 to vector<1x8xf32>
    %58 = arith.mulf %52, %57 : vector<1x8xf32>
    %59 = arith.addf %56, %58 : vector<1x8xf32>
    %60 = vector.broadcast %21 : f32 to vector<1x8xf32>
    %61 = arith.mulf %54, %60 : vector<1x8xf32>
    %62 = arith.addf %59, %61 : vector<1x8xf32>
    %63 = vector.broadcast %30 : f32 to vector<1x8xf32>
    %64 = arith.addf %62, %63 : vector<1x8xf32>
    %65 = vector.broadcast %6 : f32 to vector<1x8xf32>
    %66 = arith.mulf %50, %65 : vector<1x8xf32>
    %67 = vector.broadcast %15 : f32 to vector<1x8xf32>
    %68 = arith.mulf %52, %67 : vector<1x8xf32>
    %69 = arith.addf %66, %68 : vector<1x8xf32>
    %70 = vector.broadcast %24 : f32 to vector<1x8xf32>
    %71 = arith.mulf %54, %70 : vector<1x8xf32>
    %72 = arith.addf %69, %71 : vector<1x8xf32>
    %73 = vector.broadcast %33 : f32 to vector<1x8xf32>
    %74 = arith.addf %72, %73 : vector<1x8xf32>
    %75 = vector.broadcast %9 : f32 to vector<1x8xf32>
    %76 = arith.mulf %50, %75 : vector<1x8xf32>
    %77 = vector.broadcast %18 : f32 to vector<1x8xf32>
    %78 = arith.mulf %52, %77 : vector<1x8xf32>
    %79 = arith.addf %76, %78 : vector<1x8xf32>
    %80 = vector.broadcast %27 : f32 to vector<1x8xf32>
    %81 = arith.mulf %54, %80 : vector<1x8xf32>
    %82 = arith.addf %79, %81 : vector<1x8xf32>
    %83 = vector.broadcast %36 : f32 to vector<1x8xf32>
    %84 = arith.addf %82, %83 : vector<1x8xf32>
    %cst = arith.constant 1.000000e+00 : f32
    %85 = vector.broadcast %cst : f32 to vector<1x8xf32>
    %86 = arith.divf %85, %84 : vector<1x8xf32>
    %87 = vector.broadcast %39 : f32 to vector<1x8xf32>
    %88 = arith.mulf %64, %87 : vector<1x8xf32>
    %89 = arith.mulf %88, %86 : vector<1x8xf32>
    %90 = vector.broadcast %45 : f32 to vector<1x8xf32>
    %91 = arith.addf %89, %90 : vector<1x8xf32>
    %c0_6 = arith.constant 0 : index
    %c0_7 = arith.constant 0 : index
    %c0_8 = arith.constant 0 : index
    %92 = vector.load %arg3[%c0_6, %c0_7, %c0_8] : memref<1x3x8xf32, #tpu.memory_space<vmem>>, vector<1x1x8xf32>
    %93 = vector.shape_cast %92 : vector<1x1x8xf32> to vector<1x8xf32>
    %94 = vector.shape_cast %91 : vector<1x8xf32> to vector<1x1x8xf32>
    tpu.vector_store %arg3[%c0_6, %c0_7, %c0_8], %94 {strides = array<i32>} : memref<1x3x8xf32, #tpu.memory_space<vmem>>, vector<1x1x8xf32>,
    %95 = vector.broadcast %42 : f32 to vector<1x8xf32>
    %96 = arith.mulf %74, %95 : vector<1x8xf32>
    %97 = arith.mulf %96, %86 : vector<1x8xf32>
    %98 = vector.broadcast %48 : f32 to vector<1x8xf32>
    %99 = arith.addf %97, %98 : vector<1x8xf32>
    %c0_9 = arith.constant 0 : index
    %c1_10 = arith.constant 1 : index
    %c0_11 = arith.constant 0 : index
    %100 = vector.load %arg3[%c0_9, %c1_10, %c0_11] : memref<1x3x8xf32, #tpu.memory_space<vmem>>, vector<1x1x8xf32>
    %101 = vector.shape_cast %100 : vector<1x1x8xf32> to vector<1x8xf32>
    %102 = vector.shape_cast %99 : vector<1x8xf32> to vector<1x1x8xf32>
    tpu.vector_store %arg3[%c0_9, %c1_10, %c0_11], %102 {strides = array<i32>} : memref<1x3x8xf32, #tpu.memory_space<vmem>>, vector<1x1x8xf32>,
    %c0_12 = arith.constant 0 : index
    %c2_13 = arith.constant 2 : index
    %c0_14 = arith.constant 0 : index
    %103 = vector.load %arg3[%c0_12, %c2_13, %c0_14] : memref<1x3x8xf32, #tpu.memory_space<vmem>>, vector<1x1x8xf32>
    %104 = vector.shape_cast %103 : vector<1x1x8xf32> to vector<1x8xf32>
    %105 = vector.shape_cast %84 : vector<1x8xf32> to vector<1x1x8xf32>
    tpu.vector_store %arg3[%c0_12, %c2_13, %c0_14], %105 {strides = array<i32>} : memref<1x3x8xf32, #tpu.memory_space<vmem>>, vector<1x1x8xf32>,
    return
  }
  func.func @transform_0(%arg0: i32) -> i32 {
    %c0_i32 = arith.constant 0 : i32
    %c0_i32_0 = arith.constant 0 : i32
    return %c0_i32 : i32
  }
  func.func @transform_1(%arg0: i32) -> (i32, i32, i32) {
    %c0_i32 = arith.constant 0 : i32
    %c0_i32_0 = arith.constant 0 : i32
    %c0_i32_1 = arith.constant 0 : i32
    return %arg0, %c0_i32, %c0_i32_0 : i32, i32, i32
  }
  func.func @transform_2(%arg0: i32) -> (i32, i32, i32) {
    %c0_i32 = arith.constant 0 : i32
    %c0_i32_0 = arith.constant 0 : i32
    %c0_i32_1 = arith.constant 0 : i32
    return %arg0, %c0_i32, %c0_i32_0 : i32, i32, i32
  }
}

</mosaic_0001>

<bundles_post_ra>
// kernel: tpu_custom_call.1
= control target key start
LH: loop header
LB: loop body
LE: loop exit
PB: predicated region body
PF: predicated region fallthrough
CT: control target
= control target key end

     0   :  { %7 = vsyncpa [#allocation3], 0  ;;  %s374_s9 = smov 0   ;;  %s456_s0 = inlined_call_operand.vmem [shape: f32[36], index: 0, kind: input, shape index: {}]   ;;  %s457_s1 = inlined_call_operand.vmem [shape: f32[2,3,8], index: 1, kind: input, shape index: {}]   ;;  %s458_s2 = inlined_call_operand.vmem [shape: f32[2,3,8], index: 2, kind: output, shape index: {}]  }
   0x1 LB: > { %s299_s10 = sadd.s32 4294967295, %s356_s9   ;;  %p301_p0 = scmp.ge.s32.totalorder %s356_s9, 1  ;;  %s356_s9 = sphi %s374_s9, %s13_s9  }
   0x2   : > { %p91_p1 = scmp.lt.s32.totalorder %s356_s9, 3  ;;  %s104_s13 = sshll.u32 %s456_s0, 4  ;;  %s105_s13 = int_to_ptr.vmem [resolvable:$true] %s104_s13 }
   0x3   : > { %p318_p3 = scmp.eq.s32.totalorder %s299_s10, 0  ;;  %s331_s15 = scalar_lea.vmem %s105_s13, 16 }
   0x4   : > { %p385_p2 = pnand %p301_p0, %p91_p1  ;;  %p332_p6 = scmp.ne.s32.totalorder %s105_s13, %s331_s15 }
   0x5   : > { %p339_p10 = scmp.lt.s32.totalorder %s105_s13, %s105_s13  ;;  %p340_p11 = scmp.lt.s32.totalorder %s331_s15, %s331_s15 }
   0x6   : > { %p314_p4 = pneg %p385_p2 }
   0x7   : > { %p341_p12 = por %p340_p11, %p339_p10 }
   0x8   : > { %p315_p5 = pnand %p318_p3, %p314_p4 }
   0xa   : > { %p333_p7 = pneg %p315_p5 }
   0xc   : > { %p334_p8 = pnand %p333_p7, %p332_p6 }
   0xe   : > { %p335_p9 = pneg %p334_p8 }
  0x10   : > { %p342_p13 = pnand %p341_p12, %p335_p9 }
  0x12   : > { %345 = shalt.err (!%p342_p13)
}
  0x13   : > { %s358_s16 = smov [#allocation2]   ;;  %124 = sbr.rel (%p385_p2) target bundleno = 71 (0x47), region = 28 }
  0x14   : > { %317 = dma.vmem_to_smem (!%p315_p5), %s105_s13, 16, %s358_s16, [#allocation3]  }
  0x18   : > { %351 = dma.done.wait (%p318_p3), [#allocation3], 16  }
  0x19   : > { %353 = vsyncadd (%p318_p3), [#allocation3], 4294967280 }
  0x1a   : > { %130 = sfence }
  0x1b   : > { %p145_p0 = scmp.lt.s32.totalorder %s299_s10, 1  ;;  %s396_s17 = smul.u32 18, %s299_s10  ;;  %vm225_vm0 = vcmask 57344  }
  0x1d   : > { %s461_s10 = smov (!%p145_p0, %s299_s10), 1  ;;  %s155_s18 = sadd.s32 1, %s396_s17 }
  0x1e   : > { %s306_s19 = sshll.u32 %s461_s10, 2  ;;  %s403_s20 = sld [smem:[#allocation2 + %s396_s17]] }
  0x1f   : > { %s148_s23 = scalar_lea.vmem %s457_s1, %s306_s19  ;;  %s410_s24 = sld [smem:[#allocation2 + %s155_s18]] }
  0x20   : > { %s157_s25 = sadd.s32 2, %s396_s17  ;;  %s159_s26 = sadd.s32 3, %s396_s17  ;;  %v185_v0 = vld [vmem:[%s148_s23] sm:$0x1]  ;;  %v186_v2 = vld [vmem:[%s148_s23 + $0x1] sm:$0x1] }
  0x21   : > { %s158_s27 = sld [smem:[#allocation2 + %s157_s25]]  ;;  %s161_s28 = sadd.s32 4, %s396_s17  ;;  %v187_v7 = vld [vmem:[%s148_s23 + $0x2] sm:$0x1] }
  0x22   : > { %s160_s29 = sld [smem:[#allocation2 + %s159_s26]]  ;;  %s163_s30 = sadd.s32 5, %s396_s17 }
  0x23   : > { %s162_s3 = sld [smem:[#allocation2 + %s161_s28]]  ;;  %s165_s4 = sadd.s32 6, %s396_s17 }
  0x24   : > { %s164_s5 = sld [smem:[#allocation2 + %s163_s30]]  ;;  %s167_s6 = sadd.s32 7, %s396_s17  ;;  %v188_v4 = vstv %s403_s20 }
  0x25   : > { %s418_s7 = sld [smem:[#allocation2 + %s165_s4]]  ;;  %s169_s8 = sadd.s32 8, %s396_s17  ;;  %v198_v8 = vstv %s410_s24  ;;  %v189_v11 = vmul.f32 %v188_v4, %v185_v0 }
  0x26   : > { %s421_s11 = sld [smem:[#allocation2 + %s167_s6]]  ;;  %s175_s13 = sadd.s32 11, %s396_s17  ;;  %v199_v15 = vmul.f32 %v198_v8, %v185_v0 }
  0x27   : > { %s170_s12 = sld [smem:[#allocation2 + %s169_s8]]  ;;  %v208_v1 = vstv %s158_s27  ;;  %s171_s15 = sadd.s32 9, %s396_s17 }
  0x28   : > { %s424_s14 = sld [smem:[#allocation2 + %s175_s13]]  ;;  %v209_v3 = vmul.f32 %v208_v1, %v185_v0  ;;  %v190_v5 = vstv %s160_s29  ;;  %s173_s16 = sadd.s32 10, %s396_s17 }
  0x29   : > { %v200_v9 = vstv %s162_s3  ;;  %v191_v12 = vmul.f32 %v190_v5, %v186_v2  ;;  %s430_s18 = sld [smem:[#allocation2 + %s171_s15]]  ;;  %s177_s20 = sadd.s32 12, %s396_s17 }
  0x2a   : > { %v210_v6 = vstv %s164_s5  ;;  %v201_v16 = vmul.f32 %v200_v9, %v186_v2  ;;  %s174_s21 = sld [smem:[#allocation2 + %s173_s16]]  ;;  %s179_s22 = sadd.s32 13, %s396_s17 }
  0x2b   : > { %v211_v10 = vmul.f32 %v210_v6, %v186_v2  ;;  %v193_v18 = vstv %s418_s7  ;;  %s442_s25 = scalar_lea.vmem %s458_s2, %s306_s19  ;;  %v192_v22 = vadd.f32 %v191_v12, %v189_v11  ;;  %s178_s26 = sld [smem:[#allocation2 + %s177_s20]] }
  0x2c   : > { %v203_v19 = vstv %s421_s11  ;;  %v194_v23 = vmul.f32 %v193_v18, %v187_v7  ;;  %v202_v24 = vadd.f32 %v201_v16, %v199_v15  ;;  %s180_s27 = sld [smem:[#allocation2 + %s179_s22]]  ;;  %s181_s28 = sadd.s32 15, %s396_s17 }
  0x2d   : > { %v212_v13 = vadd.f32 %v211_v10, %v209_v3  ;;  %v213_v14 = vstv %s170_s12  ;;  %v204_v25 = vmul.f32 %v203_v19, %v187_v7  ;;  %s183_s10 = sadd.s32 16, %s396_s17  ;;  %s182_s19 = sld [smem:[#allocation2 + %s181_s28]] }
  0x2e   : > { %v214_v17 = vmul.f32 %v213_v14, %v187_v7  ;;  %v216_v20 = vstv %s424_s14  ;;  %v195_v27 = vadd.f32 %v194_v23, %v192_v22  ;;  %s184_s29 = sld [smem:[#allocation2 + %s183_s10]] }
  0x2f   : > { %v205_v28 = vadd.f32 %v204_v25, %v202_v24  ;;  %v196_v29 = vstv %s430_s18 }
  0x30   : > { %v215_v21 = vadd.f32 %v214_v17, %v212_v13  ;;  %v206_v30 = vstv %s174_s21  ;;  %v197_v31 = vadd.f32 %v196_v29, %v195_v27 }
  0x31   : > { %v207_v32 = vadd.f32 %v206_v30, %v205_v28  ;;  %v220_v33 = vstv %s178_s26 }
  0x32   : > { %v217_v26 = vadd.f32 %v216_v20, %v215_v21  ;;  %v227_v34 = vstv %s180_s27  ;;  %v221_v35 = vmul.f32 %v220_v33, %v197_v31 }
  0x33   : > { %v228_v36 = vmul.f32 %v227_v34, %v207_v32  ;;  %v223_v38 = vstv %s182_s19 }
  0x34   : > { %329 = vrcp.f32 %v217_v26  ;;  %233 = vst.msk [vmem:[%s442_s25 + $0x2] sm:$0x1] %vm225_vm0, %v217_v26  ;;  %v230_v39 = vstv %s184_s29 }
  0x41   : > { %v330_v37 = vpop.eup %329 }
  0x42   : > { %v222_v40 = vmul.f32 %v330_v37, %v221_v35  ;;  %v229_v41 = vmul.f32 %v330_v37, %v228_v36 }
  0x44   : > { %v224_v42 = vadd.f32 %v223_v38, %v222_v40  ;;  %v231_v43 = vadd.f32 %v230_v39, %v229_v41 }
  0x46   : > { %226 = vst.msk [vmem:[%s442_s25] sm:$0x1] %vm225_vm0, %v224_v42  ;;  %232 = vst.msk [vmem:[%s442_s25 + $0x1] sm:$0x1] %vm225_vm0, %v231_v43 }
  0x47 PF: > { %s13_s9 = sadd.s32 1, %s356_s9  }
  0x48   : > { %p10_p1 = scmp.ge.s32.totalorder %s13_s9, 4  }
  0x4a   :  { %12 = sbr.rel (!%p10_p1) target bundleno = 1 (0x1), region = 63 }
  0x4f   :  { %253 = vsyncpa [#allocation3], 1 }
  0x50   :  { %255 = vsyncpa [#allocation3 + $0x1], 1 }

</bundles_post_ra>
